<compile_context>
chip_gen: v7x
topology: tpu7x:2x2x1
jax: 0.10.0
libtpu: 0.0.40
codegen_flags: <defaults>
</compile_context>

<pallas_src>
import math

import numpy as np

import jax
import jax.numpy as jnp
from jax.experimental import pallas as pl
from jax.experimental.pallas import tpu as pltpu


_MAX_BLOCK_BYTES = 2 * 1024 * 1024  # per-tile; x2 buffers x(in+out) stays inside
                                    # default scoped VMEM on v5e/v6e/v7x.


def _copy_kernel(y_ref, o_ref):
    # Whole-tile passthrough (identity forward).
    o_ref[...] = y_ref[...]


def conv1d_autoencoder_forward(y: jax.Array) -> jax.Array:
    """Pallas implementation of conv1d_autoencoder.forward (identity)."""
    orig_shape = y.shape
    total = int(y.size)

    # Collapse (B, C, L) into a lane-dense 2D slab: last dim a multiple of 128
    # (as wide as divisibility allows), so stores are unmasked full-vreg vst.
    cols = None
    for cand in (2048, 1024, 512, 256, 128):
        if total % cand == 0:
            cols = cand
            break
    if cols is None:
        # Not 128-divisible: a single full-array block is still legal
        # (block dims equal to full array dims bypass the (8,128) rule).
        rows, cols = 1, total
    else:
        rows = total // cols
    y2 = y.reshape(rows, cols)

    # Pick the biggest row-tile that fits the VMEM budget.  Either the full
    # row extent (always legal) or a multiple of 8 (legal sublane tiling).
    itemsize = jnp.dtype(y.dtype).itemsize
    max_rows = max(8, _MAX_BLOCK_BYTES // (cols * itemsize))
    if rows <= max_rows:
        block_rows = rows
    else:
        block_rows = (max_rows // 8) * 8

    grid = (pl.cdiv(rows, block_rows),)
    spec = pl.BlockSpec((block_rows, cols), lambda i: (i, 0))

    out2 = pl.pallas_call(
        _copy_kernel,
        out_shape=jax.ShapeDtypeStruct((rows, cols), y.dtype),
        grid=grid,
        in_specs=[spec],
        out_specs=spec,
        input_output_aliases={0: 0},  # output buffer is the (donated) input
        compiler_params=pltpu.CompilerParams(
            dimension_semantics=("parallel",),
        ),
    )(y2)
    return out2.reshape(orig_shape)


if __name__ == "__main__":
    # Module hyperparameters (deterministic, in-script).
    spectrum_decomp_length = 64   # power of 2, >= latent_space_dim
    spectrum_channel_nb = 4
    latent_space_dim = 16
    batch = 2

    # Mirrors __init__ bookkeeping (no parameters are actually created).
    num_conv_layers = int(
        math.log(spectrum_decomp_length, 2) - math.log(latent_space_dim, 2)
    )
    assert num_conv_layers == 2

    key = jax.random.PRNGKey(0)
    y = jax.random.normal(
        key, (batch, spectrum_channel_nb, spectrum_decomp_length), dtype=jnp.float32
    )

    # Snapshot the expected result on host before calling the kernel, since
    # the kernel aliases (donates) its input buffer.
    y_host = np.asarray(y)

    out = conv1d_autoencoder_forward(y)
    out = jax.block_until_ready(out)

    # Forward is the identity; verify exact match.
    assert out.shape == tuple(y_host.shape)
    assert out.dtype == y_host.dtype
    assert np.array_equal(np.asarray(out), y_host)

    print("KERNEL_OK")
</pallas_src>

<mosaic_0001>
module attributes {stable_mosaic.version = 11 : i64} {
  func.func @_copy_kernel(%arg0: i32, %arg1: memref<1x512xf32, #tpu.memory_space<vmem>>, %arg2: memref<1x512xf32, #tpu.memory_space<vmem>>) attributes {dimension_semantics = [#tpu.dimension_semantics<parallel>], iteration_bounds = array<i64: 1>, scalar_prefetch = 0 : i64, scratch_operands = 0 : i64, tpu.core_type = #tpu.core_type<tc>, window_params = [{transform_indices = @transform_0, window_bounds = array<i64: 1, 512>}, {transform_indices = @transform_1, window_bounds = array<i64: 1, 512>}]} {
    %c0 = arith.constant 0 : index
    %c0_0 = arith.constant 0 : index
    %0 = vector.load %arg1[%c0, %c0_0] : memref<1x512xf32, #tpu.memory_space<vmem>>, vector<1x512xf32>
    %c0_1 = arith.constant 0 : index
    %c0_2 = arith.constant 0 : index
    %1 = vector.load %arg2[%c0_1, %c0_2] : memref<1x512xf32, #tpu.memory_space<vmem>>, vector<1x512xf32>
    tpu.vector_store %arg2[%c0_1, %c0_2], %0 {strides = array<i32>} : memref<1x512xf32, #tpu.memory_space<vmem>>, vector<1x512xf32>,
    return
  }
  func.func @transform_0(%arg0: i32) -> (i32, i32) {
    %c0_i32 = arith.constant 0 : i32
    %c0_i32_0 = arith.constant 0 : i32
    return %arg0, %c0_i32 : i32, i32
  }
  func.func @transform_1(%arg0: i32) -> (i32, i32) {
    %c0_i32 = arith.constant 0 : i32
    %c0_i32_0 = arith.constant 0 : i32
    return %arg0, %c0_i32 : i32, i32
  }
}

</mosaic_0001>

<bundles_post_ra>
// kernel: tpu_custom_call.1
= control target key start
LH: loop header
LB: loop body
LE: loop exit
PB: predicated region body
PF: predicated region fallthrough
CT: control target
= control target key end

     0   :  { %6 = vsyncpa [#allocation3], 0  ;;  %s128_s0 = inlined_call_operand.hbm [shape: f32[1,512], index: 0, kind: input, shape index: {}, may-alias: {0,1}]   ;;  %s129_s1 = inlined_call_operand.hbm [shape: f32[1,512], index: 1, kind: output, shape index: {}, may-alias: {0,1}]  }
   0x1   :  { %7 = vsyncpa [#allocation4], 0  ;;  %s92_s6 = smov [#allocation2]   ;;  %s44_s10 = scalar_lea.hbm %s128_s0, 64 }
   0x2   :  { %s14_s7 = sshll.u32 %s92_s6, 4  ;;  %p45_p0 = scmp.ne.s32.totalorder %s128_s0, %s44_s10  ;;  %s15_s7 = int_to_ptr.vmem [resolvable:$true] %s14_s7 }
   0x3   :  { %p48_p1 = scmp.lt.u32.totalorder %s44_s10, %s128_s0 }
   0x5   :  { %p50_p2 = pnand %p48_p1, %p45_p0 }
   0x7   :  { %53 = shalt.err (!%p50_p2)
}
   0x8   :  { %s54_s15 = scalar_lea.vmem %s15_s7, 64  ;;  %p59_p4 = scmp.lt.s32.totalorder %s15_s7, %s15_s7 }
   0x9   :  { %p55_p3 = scmp.ne.s32.totalorder %s15_s7, %s54_s15  ;;  %p60_p5 = scmp.lt.s32.totalorder %s54_s15, %s54_s15 }
   0xb   :  { %p61_p6 = por %p60_p5, %p59_p4 }
   0xd   :  { %p62_p7 = pnand %p61_p6, %p55_p3 }
   0xf   :  { %65 = shalt.err (!%p62_p7)
}
  0x10   :  { %17 = dma.hbm_to_vmem [thread:$0]  %s128_s0, 64, %s15_s7, [#allocation3]  }
  0x11   :  { %88 = dma.done.wait [#allocation3], 64  }
  0x12   :  { %89 = vsyncadd [#allocation3], 4294967232  ;;  %v22_v0 = vlaneseq  ;;  %s93_s18 = smov [#allocation5]   ;;  %v21_v1 = vld [vmem:[#allocation2] sm:$0xf] }
  0x13   :  { %s33_s19 = sshll.u32 %s93_s18, 4  ;;  %s34_s19 = int_to_ptr.vmem [resolvable:$true] %s33_s19 }
  0x14   :  { %vm24_vm0 = vcmp.lt.s32.totalorder %v22_v0, 512  ;;  %s66_s20 = scalar_lea.vmem %s34_s19, 64  ;;  %p71_p9 = scmp.lt.s32.totalorder %s34_s19, %s34_s19 }
  0x15   :  { %26 = vst.msk [vmem:[#allocation5] sm:$0xf] %vm24_vm0, %v21_v1  ;;  %p67_p8 = scmp.ne.s32.totalorder %s34_s19, %s66_s20  ;;  %p72_p10 = scmp.lt.s32.totalorder %s66_s20, %s66_s20 }
  0x17   :  { %p73_p11 = por %p72_p10, %p71_p9 }
  0x19   :  { %p74_p12 = pnand %p73_p11, %p67_p8 }
  0x1b   :  { %77 = shalt.err (!%p74_p12)
}
  0x1c   :  { %s78_s0 = scalar_lea.hbm %s129_s1, 64 }
  0x1d   :  { %p79_p13 = scmp.ne.s32.totalorder %s129_s1, %s78_s0  ;;  %p82_p0 = scmp.lt.u32.totalorder %s78_s0, %s129_s1 }
  0x1f   :  { %p84_p1 = pnand %p82_p0, %p79_p13 }
  0x21   :  { %87 = shalt.err (!%p84_p1)
}
  0x22   :  { %36 = dma.vmem_to_hbm [thread:$0]  %s34_s19, 64, %s129_s1, [#allocation4]  }
  0x23   :  { %90 = dma.done.wait [#allocation4], 64  }
  0x24   :  { %91 = vsyncadd [#allocation4], 4294967232 }
  0x25   :  { %40 = vsyncpa [#allocation3], 1 }
  0x26   :  { %41 = vsyncpa [#allocation4], 1 }

</bundles_post_ra>
